<compile_context>
chip_gen: v6e
topology: v6e:2x2x1
jax: 0.10.0
libtpu: 0.0.40
codegen_flags: <defaults>
</compile_context>

<pallas_src>
import jax
import jax.numpy as jnp
from jax.experimental import pallas as pl
from jax.experimental.pallas import tpu as pltpu


# ---------------------------------------------------------------------------
# Pallas kernel: one fused GCN layer for a column tile of nodes.
#   xt_ref : [F, N]   resident transposed activations  X^T
#   a_ref  : [N, TN]  streaming column slab of A_hat^T
#   wt_ref : [F, F]   resident W^T
#   b_ref  : [F, 1]   resident bias (column vector)
#   o_ref  : [F, TN]  lane-dense output tile of H^T
# ---------------------------------------------------------------------------
def gcn_layer_kernel(xt_ref, a_ref, wt_ref, b_ref, o_ref):
    # Neighbour aggregation for this tile of nodes:  agg = X^T @ A_hat^T[:, tile]
    agg = jnp.dot(xt_ref[...], a_ref[...], preferred_element_type=jnp.float32)
    # Per-node projection + bias + ReLU (fuses per tile since W acts node-wise):
    h = jnp.dot(wt_ref[...], agg, preferred_element_type=jnp.float32) + b_ref[...]
    o_ref[...] = jnp.maximum(h, 0.0).astype(o_ref.dtype)


def _pick_col_tile(n, vmem_budget_bytes=10 * 1024 * 1024):
    """Column tile TN: keep the double-buffered (N, TN) f32 A-slab under budget."""
    if n <= 512:
        return n                       # small graphs: one full-width tile
    tn = vmem_budget_bytes // (2 * 4 * n)
    tn = (tn // 128) * 128             # keep lane-aligned, MXU-friendly
    return int(max(128, min(tn, n)))


def gcn_layer(xt, a_hat_t, wt, b_col, tn):
    f, n = xt.shape
    return pl.pallas_call(
        gcn_layer_kernel,
        out_shape=jax.ShapeDtypeStruct((f, n), jnp.float32),
        grid=(pl.cdiv(n, tn),),
        in_specs=[
            pl.BlockSpec((f, n), lambda j: (0, 0)),    # X^T     (resident)
            pl.BlockSpec((n, tn), lambda j: (0, j)),   # A_hat^T (streamed column slab)
            pl.BlockSpec((f, f), lambda j: (0, 0)),    # W^T     (resident)
            pl.BlockSpec((f, 1), lambda j: (0, 0)),    # bias    (resident)
        ],
        out_specs=pl.BlockSpec((f, tn), lambda j: (0, j)),
        compiler_params=pltpu.CompilerParams(
            dimension_semantics=("parallel",)),        # megacore sharding on v7x
    )(xt, a_hat_t, wt, b_col)


# ---------------------------------------------------------------------------
# Graph preprocessing (JAX glue, once per graph, off the per-layer hot path):
# build the TRANSPOSE of the symmetrically-normalized adjacency with self loops.
#   A[d, s] = 1 for edge s -> d ;  A_hat = D^{-1/2}(A+I)D^{-1/2} ;  we need A_hat^T.
# ---------------------------------------------------------------------------
def build_normalized_adjacency_t(edge_index, n):
    src, dst = edge_index[0], edge_index[1]
    adj_t = jnp.zeros((n, n), dtype=jnp.float32).at[src, dst].set(1.0)   # == A^T
    adj_t = jnp.minimum(adj_t + jnp.eye(n, dtype=jnp.float32), 1.0)      # self loops, dedup
    deg = jnp.sum(adj_t, axis=0)                                         # row sums of A
    dinv = jnp.where(deg > 0, jax.lax.rsqrt(deg), 0.0)
    return dinv[:, None] * adj_t * dinv[None, :]                         # == A_hat^T


def gcn_forward(x, edge_index, w1, b1, w2, b2):
    """x: [N, F] f32, edge_index: [2, E] int32. Returns [N, F]."""
    n, f = x.shape
    a_hat_t = build_normalized_adjacency_t(edge_index, n)   # once per graph
    tn = _pick_col_tile(n)

    xt = x.T                                                 # [F, N] (layout plumbing)
    ht = gcn_layer(xt, a_hat_t, w1.T, b1.reshape(f, 1), tn)  # layer 1 + ReLU
    ht = gcn_layer(ht, a_hat_t, w2.T, b2.reshape(f, 1), tn)  # layer 2 + ReLU
    return ht.T                                              # back to [N, F]


# ---------------------------------------------------------------------------
# Pure-JAX reference (same semantics as the PyG 2-layer GCNConv + ReLU model)
# ---------------------------------------------------------------------------
def reference_forward(x, edge_index, w1, b1, w2, b2):
    n = x.shape[0]
    src, dst = edge_index[0], edge_index[1]
    adj = jnp.zeros((n, n), dtype=jnp.float32).at[dst, src].set(1.0)
    adj = jnp.minimum(adj + jnp.eye(n, dtype=jnp.float32), 1.0)
    deg = jnp.sum(adj, axis=1)
    dinv = jnp.where(deg > 0, 1.0 / jnp.sqrt(deg), 0.0)
    a_hat = dinv[:, None] * adj * dinv[None, :]
    h = jnp.maximum(a_hat @ (x @ w1) + b1, 0.0)
    h = jnp.maximum(a_hat @ (h @ w2) + b2, 0.0)
    return h


if __name__ == "__main__":
    N = 32          # num nodes
    F = 16          # dataset.num_node_features (in == out channels for GCNConv)

    key = jax.random.PRNGKey(0)
    kx, kw1, kw2, ke = jax.random.split(key, 4)

    x = jax.random.normal(kx, (N, F), dtype=jnp.float32)

    # deterministic ring graph (both directions) + a few random chords
    idx = jnp.arange(N, dtype=jnp.int32)
    ring_src = jnp.concatenate([idx, (idx + 1) % N])
    ring_dst = jnp.concatenate([(idx + 1) % N, idx])
    rand_src = jax.random.randint(ke, (8,), 0, N, dtype=jnp.int32)
    rand_dst = (rand_src + 5) % N
    edge_index = jnp.stack([jnp.concatenate([ring_src, rand_src]),
                            jnp.concatenate([ring_dst, rand_dst])])  # [2, E]

    # deterministic Glorot-ish parameter init (GCNConv weight [F, F], bias [F])
    scale = (2.0 / (F + F)) ** 0.5
    w1 = scale * jax.random.normal(kw1, (F, F), dtype=jnp.float32)
    b1 = jnp.zeros((F,), dtype=jnp.float32)
    w2 = scale * jax.random.normal(kw2, (F, F), dtype=jnp.float32)
    b2 = jnp.zeros((F,), dtype=jnp.float32)

    out = gcn_forward(x, edge_index, w1, b1, w2, b2)
    out = jax.block_until_ready(out)

    ref = reference_forward(x, edge_index, w1, b1, w2, b2)
    assert out.shape == (N, F)
    assert jnp.allclose(out, ref, atol=1e-5, rtol=1e-5), "mismatch vs JAX reference"

    print("KERNEL_OK")
</pallas_src>

<mosaic_0001>
module attributes {stable_mosaic.version = 11 : i64} {
  func.func @gcn_layer_kernel(%arg0: i32, %arg1: memref<16x32xf32, #tpu.memory_space<vmem>>, %arg2: memref<32x32xf32, #tpu.memory_space<vmem>>, %arg3: memref<16x16xf32, #tpu.memory_space<vmem>>, %arg4: memref<16x1xf32, #tpu.memory_space<vmem>>, %arg5: memref<16x32xf32, #tpu.memory_space<vmem>>) attributes {dimension_semantics = [#tpu.dimension_semantics<parallel>], iteration_bounds = array<i64: 1>, scalar_prefetch = 0 : i64, scratch_operands = 0 : i64, tpu.core_type = #tpu.core_type<tc>, window_params = [{pipeline_mode = #tpu.pipeline_mode<synchronous>, transform_indices = @transform_0, window_bounds = array<i64: 16, 32>}, {transform_indices = @transform_1, window_bounds = array<i64: 32, 32>}, {pipeline_mode = #tpu.pipeline_mode<synchronous>, transform_indices = @transform_2, window_bounds = array<i64: 16, 16>}, {pipeline_mode = #tpu.pipeline_mode<synchronous>, transform_indices = @transform_3, window_bounds = array<i64: 16, 1>}, {transform_indices = @transform_4, window_bounds = array<i64: 16, 32>}]} {
    %c0 = arith.constant 0 : index
    %c0_0 = arith.constant 0 : index
    %0 = vector.load %arg1[%c0, %c0_0] : memref<16x32xf32, #tpu.memory_space<vmem>>, vector<16x32xf32>
    %c0_1 = arith.constant 0 : index
    %c0_2 = arith.constant 0 : index
    %1 = vector.load %arg2[%c0_1, %c0_2] : memref<32x32xf32, #tpu.memory_space<vmem>>, vector<32x32xf32>
    %cst = arith.constant dense<0.000000e+00> : vector<16x32xf32>
    %2 = tpu.matmul %0, %1, %cst {dimension_numbers = #tpu.dot_dimension_numbers<[1], [0], [0], [1], [0, 0, 1, 1], [], []>} : vector<16x32xf32>, vector<32x32xf32>, vector<16x32xf32> -> vector<16x32xf32>
    %c0_3 = arith.constant 0 : index
    %c0_4 = arith.constant 0 : index
    %3 = vector.load %arg3[%c0_3, %c0_4] : memref<16x16xf32, #tpu.memory_space<vmem>>, vector<16x16xf32>
    %cst_5 = arith.constant dense<0.000000e+00> : vector<16x32xf32>
    %4 = tpu.matmul %3, %2, %cst_5 {dimension_numbers = #tpu.dot_dimension_numbers<[1], [0], [0], [1], [0, 0, 1, 1], [], []>} : vector<16x16xf32>, vector<16x32xf32>, vector<16x32xf32> -> vector<16x32xf32>
    %c0_6 = arith.constant 0 : index
    %c0_7 = arith.constant 0 : index
    %5 = vector.load %arg4[%c0_6, %c0_7] : memref<16x1xf32, #tpu.memory_space<vmem>>, vector<16x1xf32>
    %6 = vector.broadcast %5 : vector<16x1xf32> to vector<16x32xf32>
    %7 = arith.addf %4, %6 : vector<16x32xf32>
    %cst_8 = arith.constant 0.000000e+00 : f32
    %8 = vector.broadcast %cst_8 : f32 to vector<16x32xf32>
    %9 = arith.maximumf %7, %8 : vector<16x32xf32>
    %c0_9 = arith.constant 0 : index
    %c0_10 = arith.constant 0 : index
    %10 = vector.load %arg5[%c0_9, %c0_10] : memref<16x32xf32, #tpu.memory_space<vmem>>, vector<16x32xf32>
    tpu.vector_store %arg5[%c0_9, %c0_10], %9 {strides = array<i32>} : memref<16x32xf32, #tpu.memory_space<vmem>>, vector<16x32xf32>,
    return
  }
  func.func @transform_0(%arg0: i32) -> (i32, i32) {
    %c0_i32 = arith.constant 0 : i32
    %c0_i32_0 = arith.constant 0 : i32
    %c0_i32_1 = arith.constant 0 : i32
    return %c0_i32, %c0_i32_0 : i32, i32
  }
  func.func @transform_1(%arg0: i32) -> (i32, i32) {
    %c0_i32 = arith.constant 0 : i32
    %c0_i32_0 = arith.constant 0 : i32
    return %c0_i32, %arg0 : i32, i32
  }
  func.func @transform_2(%arg0: i32) -> (i32, i32) {
    %c0_i32 = arith.constant 0 : i32
    %c0_i32_0 = arith.constant 0 : i32
    %c0_i32_1 = arith.constant 0 : i32
    return %c0_i32, %c0_i32_0 : i32, i32
  }
  func.func @transform_3(%arg0: i32) -> (i32, i32) {
    %c0_i32 = arith.constant 0 : i32
    %c0_i32_0 = arith.constant 0 : i32
    %c0_i32_1 = arith.constant 0 : i32
    return %c0_i32, %c0_i32_0 : i32, i32
  }
  func.func @transform_4(%arg0: i32) -> (i32, i32) {
    %c0_i32 = arith.constant 0 : i32
    %c0_i32_0 = arith.constant 0 : i32
    return %c0_i32, %arg0 : i32, i32
  }
}

</mosaic_0001>

<bundles_post_ra>
// kernel: tpu_custom_call.1
= control target key start
LH: loop header
LB: loop body
LE: loop exit
PB: predicated region body
PF: predicated region fallthrough
CT: control target
= control target key end

     0   :  { %9 = vsyncpa [#allocation3], 0  ;;  %s422_s0 = inlined_call_operand.vmem [shape: f32[16,32], index: 0, kind: input, shape index: {}]   ;;  %s423_s1 = inlined_call_operand.hbm [shape: f32[32,32], index: 1, kind: input, shape index: {}]   ;;  %s424_s2 = inlined_call_operand.hbm [shape: f32[16,16], index: 2, kind: input, shape index: {}]   ;;  %s425_s3 = inlined_call_operand.vmem [shape: f32[16,1], index: 3, kind: input, shape index: {}]   ;;  %s426_s4 = inlined_call_operand.hbm [shape: f32[16,32], index: 4, kind: output, shape index: {}]  }
   0x1   :  { %10 = vsyncpa [#allocation6], 0 }
   0x2   :  { %11 = vsyncpa [#allocation4], 0  ;;  %s357_s15 = smov [#allocation2]  }
   0x3   :  { %s19_s16 = sshll.u32 %s357_s15, 4  ;;  %s20_s16 = int_to_ptr.vmem [resolvable:$true] %s19_s16 }
   0x4   :  { %s299_s17 = scalar_lea.vmem %s20_s16, 512  ;;  %p304_p1 = scmp.lt.s32.totalorder %s20_s16, %s20_s16 }
   0x5   :  { %p300_p0 = scmp.ne.s32.totalorder %s20_s16, %s299_s17  ;;  %p305_p2 = scmp.lt.s32.totalorder %s299_s17, %s299_s17 }
   0x7   :  { %p306_p3 = por %p305_p2, %p304_p1 }
   0x9   :  { %p307_p4 = pnand %p306_p3, %p300_p0 }
   0xb   :  { %310 = shalt.err (!%p307_p4)
}
   0xc   :  { %s358_s18 = smov 128   ;;  %s359_s19 = smov 8  }
   0xd   :  { %25 = dma.hbm_to_vmem [thread:$0]  %s423_s1, 512, %s20_s16, [#allocation3], %s358_s18, %s358_s18, %s359_s19  }
   0xe   :  { %s360_s22 = smov [#allocation5]  }
   0xf   :  { %s31_s23 = sshll.u32 %s360_s22, 4  ;;  %s32_s23 = int_to_ptr.vmem [resolvable:$true] %s31_s23 }
  0x10   :  { %s319_s24 = scalar_lea.vmem %s32_s23, 256  ;;  %p324_p6 = scmp.lt.s32.totalorder %s32_s23, %s32_s23 }
  0x11   :  { %p320_p5 = scmp.ne.s32.totalorder %s32_s23, %s319_s24  ;;  %p325_p7 = scmp.lt.s32.totalorder %s319_s24, %s319_s24 }
  0x13   :  { %p326_p8 = por %p325_p7, %p324_p6 }
  0x15   :  { %p327_p9 = pnand %p326_p8, %p320_p5 }
  0x17   :  { %330 = shalt.err (!%p327_p9)
}
  0x18   :  { %37 = dma.hbm_to_vmem [thread:$0]  %s424_s2, 256, %s32_s23, [#allocation6], %s358_s18, %s358_s18, %s359_s19  }
  0x19   :  { %351 = dma.done.wait [#allocation3], 512  }
  0x1a   :  { %352 = vsyncadd [#allocation3], 4294966784 }
  0x1b   :  { %353 = dma.done.wait [#allocation6], 256  }
  0x1c   :  { %354 = vsyncadd [#allocation6], 4294967040  ;;  %vm52_vm0 = vcmask 261120   ;;  %v51_v0 = vld [vmem:[#allocation2 + $0x18] sm:$0xff]  ;;  %v50_v1 = vld [vmem:[#allocation2 + $0x10] sm:$0xff]  ;;  %vm148_vm1 = vcmask 130048  }
  0x1d   :  { %266 = vmatprep.subr.mxu0 %v51_v0  ;;  %v46_v2 = vld [vmem:[%s422_s0] sm:$0xff]  ;;  %v49_v3 = vld [vmem:[#allocation2 + $0x8] sm:$0xff]  ;;  %v361_v8 = vmov 0  }
  0x1e   :  { %267 = vmatpush3.msra.mxu0 %v51_v0  ;;  %274 = vmatprep.mubr.msk.f32.mxu0 %vm52_vm0, %v46_v2  ;;  %v48_v4 = vld [vmem:[#allocation2] sm:$0xff]  ;;  %v47_v5 = vld [vmem:[%s422_s0 + $0x8] sm:$0xff]  ;;  %s362_s0 = smov [#allocation7]  }
  0x1f   :  { %268 = vmatprep.subr.mxu0 %v50_v1  ;;  %v134_v6 = vld [vmem:[#allocation5] sm:$0xff]  ;;  %290 = vset.pattern.permute.xlu0 %v361_v8  ;;  %v137_v9 = vld [vmem:[%s425_s3 + $0x8] sm:$0xff]  ;;  %s239_s7 = sshll.u32 %s362_s0, 4  ;;  %s240_s7 = int_to_ptr.vmem [resolvable:$true] %s239_s7 }
  0x20   :  { %269 = vmatpush3.msra.mxu0 %v50_v1  ;;  %281 = vmatprep.mubr.msk.f32.mxu1 %vm148_vm1, %v134_v6  ;;  %v136_v7 = vld [vmem:[%s425_s3] sm:$0xff]  ;;  %v135_v12 = vld [vmem:[#allocation5 + $0x8] sm:$0xff]  ;;  %s331_s3 = scalar_lea.vmem %s240_s7, 256  ;;  %p336_p11 = scmp.lt.s32.totalorder %s240_s7, %s240_s7 }
  0x21   :  { %270 = vmatprep.subr.mxu0 %v49_v3  ;;  %140 = vperm.xlu0 %290, %v136_v7   ;;  %p332_p10 = scmp.ne.s32.totalorder %s240_s7, %s331_s3  ;;  %p337_p12 = scmp.lt.s32.totalorder %s331_s3, %s331_s3 }
  0x22   :  { %271 = vmatpush3.msra.mxu0 %v49_v3 }
  0x23   :  { %272 = vmatprep.subr.mxu0 %v48_v4  ;;  %p338_p13 = por %p337_p12, %p336_p11 }
  0x24   :  { %273 = vmatpush3.msra.mxu0 %v48_v4 }
  0x25   :  { %275 = vmatmul.mubr.msk.f32.vlgmr.msra.gmra.mxu0 %vm52_vm0, %v47_v5  ;;  %145 = vperm.xlu0 %290, %v137_v9   ;;  %p339_p0 = pnand %p338_p13, %p332_p10 }
  0x9c   :  { %v141_v13 = vpop.permute.xlu0 %140 }
  0xa0   :  { %v146_v14 = vpop.permute.xlu0 %145 }
  0xe5   :  { %v276_v10 = vpop.f32.mrf.mxu0 }
  0xe6   :  { %277 = vmatprep.subr.mxu1 %v276_v10 }
  0xe7   :  { %v125_v11 = vpop.f32.mrf.mxu0  ;;  %278 = vmatpush3.msra.mxu1 %v276_v10 }
  0xe8   :  { %279 = vmatprep.subr.mxu1 %v125_v11 }
  0xe9   :  { %280 = vmatpush3.msra.mxu1 %v125_v11 }
  0xea   :  { %282 = vmatmul.mubr.msk.f32.vlgmr.msra.gmra.mxu1 %vm148_vm1, %v135_v12 }
 0x1aa   :  { %v283_v15 = vpop.f32.mrf.mxu1 }
 0x1ab   :  { %v227_v16 = vadd.f32 %v283_v15, %v146_v14 }
 0x1ac   :  { %v221_v17 = vpop.f32.mrf.mxu1 }
 0x1ad   :  { %v231_v18 = vmax.f32 %v227_v16, 0.0  ;;  %v222_v19 = vadd.f32 %v221_v17, %v141_v13 }
 0x1af   :  { %233 = vst.msk [vmem:[#allocation7 + $0x8] sm:$0xff] %vm52_vm0, %v231_v18  ;;  %v230_v20 = vmax.f32 %v222_v19, 0.0 }
 0x1b1   :  { %232 = vst.msk [vmem:[#allocation7] sm:$0xff] %vm52_vm0, %v230_v20 }
 0x1b2   :  { %342 = shalt.err (!%p339_p0)
}
 0x1b3   :  { %245 = dma.vmem_to_hbm [thread:$0]  %s240_s7, 256, %s426_s4, [#allocation4], %s358_s18, %s358_s18, %s359_s19  }
 0x1b4   :  { %355 = dma.done.wait [#allocation4], 256  }
 0x1b5   :  { %356 = vsyncadd [#allocation4], 4294967040 }
 0x1b6   :  { %249 = vsyncpa [#allocation3], 1 }
 0x1b7   :  { %250 = vsyncpa [#allocation6], 1 }
 0x1b8   :  { %251 = vsyncpa [#allocation4], 1 }

</bundles_post_ra>
